<compile_context>
chip_gen: v7x
topology: tpu7x:2x2x1
jax: 0.10.0
libtpu: 0.0.40
codegen_flags: <defaults>
</compile_context>

<pallas_src>
import jax
import jax.numpy as jnp
from jax.experimental import pallas as pl
from jax.experimental.pallas import tpu as pltpu


def mlp_kernel(xT_ref, w1_ref, b1_ref, w2_ref, b2_ref, yT_ref):
    # xT: (Din, TB) bf16 | w1: (Dh, Din) bf16 | b1: (Dh, 1) f32
    # w2: (Dout, Dh) f32 | b2: (Dout, 1) f32  | yT: (Dout, TB) f32
    h = jnp.dot(w1_ref[...], xT_ref[...],
                preferred_element_type=jnp.float32)        # (Dh, TB), f32 acc on MXU
    h = jnp.maximum(h + b1_ref[...], 0.0)                  # bias + ReLU, lane-dense VPU
    y = jnp.dot(w2_ref[...], h,
                preferred_element_type=jnp.float32)        # (Dout, TB)
    yT_ref[...] = (y + b2_ref[...]).astype(yT_ref.dtype)


def neural_network_forward(x, w1, b1, w2, b2, *, tb=32768):
    """Forward pass of the MLP.

    x : (B, 7) f32
    w1: (40, 7), b1: (40,)   -- PyTorch nn.Linear (out, in) layout
    w2: (1, 40), b2: (1,)
    returns (B, 1) f32
    """
    B, d_in = x.shape
    d_h = w1.shape[0]
    d_out = w2.shape[0]

    # Adapt the lane-tile to the batch: at least 128 lanes (vreg width), never
    # bigger than the (128-rounded) batch, capped at `tb` for VMEM residency.
    tb = max(128, min(tb, pl.cdiv(B, 128) * 128))

    # Pad batch to a multiple of the lane-tile and transpose so batch -> lanes.
    b_pad = pl.cdiv(B, tb) * tb
    x_pad = jnp.pad(x, ((0, b_pad - B), (0, 0)))
    xT = x_pad.T.astype(jnp.bfloat16)                      # (d_in, b_pad)

    grid = (b_pad // tb,)
    yT = pl.pallas_call(
        mlp_kernel,
        out_shape=jax.ShapeDtypeStruct((d_out, b_pad), jnp.float32),
        grid=grid,
        in_specs=[
            pl.BlockSpec((d_in, tb), lambda i: (0, i)),     # streamed x^T tiles
            pl.BlockSpec((d_h, d_in), lambda i: (0, 0)),    # resident W1
            pl.BlockSpec((d_h, 1), lambda i: (0, 0)),       # resident b1 (column)
            pl.BlockSpec((d_out, d_h), lambda i: (0, 0)),   # resident W2
            pl.BlockSpec((d_out, 1), lambda i: (0, 0)),     # resident b2
        ],
        out_specs=pl.BlockSpec((d_out, tb), lambda i: (0, i)),  # lane-dense output
        compiler_params=pltpu.CompilerParams(
            dimension_semantics=("parallel",)),
    )(
        xT,
        w1.astype(jnp.bfloat16),
        b1.reshape(d_h, 1).astype(jnp.float32),
        w2.astype(jnp.float32),
        b2.reshape(d_out, 1).astype(jnp.float32),
    )
    return yT[:, :B].T.reshape(B, d_out)                    # (B, 1)


def init_params(key):
    """Deterministic PyTorch-style (uniform +/- 1/sqrt(fan_in)) init, (out, in) layout."""
    k1, k2, k3, k4 = jax.random.split(key, 4)
    bound1 = 1.0 / jnp.sqrt(7.0)
    bound2 = 1.0 / jnp.sqrt(40.0)
    w1 = jax.random.uniform(k1, (40, 7), jnp.float32, -bound1, bound1)
    b1 = jax.random.uniform(k2, (40,), jnp.float32, -bound1, bound1)
    w2 = jax.random.uniform(k3, (1, 40), jnp.float32, -bound2, bound2)
    b2 = jax.random.uniform(k4, (1,), jnp.float32, -bound2, bound2)
    return w1, b1, w2, b2


if __name__ == "__main__":
    key = jax.random.PRNGKey(0)
    kx, kp = jax.random.split(key)

    B = 8
    x = jax.random.normal(kx, (B, 7), dtype=jnp.float32)
    w1, b1, w2, b2 = init_params(kp)

    out = neural_network_forward(x, w1, b1, w2, b2)
    out = jax.block_until_ready(out)
    assert out.shape == (B, 1)

    # Pure-JAX reference with the same bf16 input / f32-accumulate recipe.
    x_bf = x.astype(jnp.bfloat16).astype(jnp.float32)
    w1_bf = w1.astype(jnp.bfloat16).astype(jnp.float32)
    h_ref = jnp.maximum(x_bf @ w1_bf.T + b1, 0.0)
    ref = h_ref @ w2.T + b2
    assert jnp.allclose(out, ref, atol=1e-4, rtol=1e-4), (out, ref)

    # Loose check against the full-f32 reference (bf16 quantization error only).
    ref_f32 = jnp.maximum(x @ w1.T + b1, 0.0) @ w2.T + b2
    assert jnp.allclose(out, ref_f32, atol=5e-2, rtol=5e-2)

    print("KERNEL_OK")
</pallas_src>

<mosaic_0001>
module attributes {stable_mosaic.version = 11 : i64} {
  func.func @mlp_kernel(%arg0: i32, %arg1: memref<7x128xbf16, #tpu.memory_space<vmem>>, %arg2: memref<40x7xbf16, #tpu.memory_space<vmem>>, %arg3: memref<40x1xf32, #tpu.memory_space<vmem>>, %arg4: memref<1x40xf32, #tpu.memory_space<vmem>>, %arg5: memref<1x1xf32, #tpu.memory_space<vmem>>, %arg6: memref<1x128xf32, #tpu.memory_space<vmem>>) attributes {dimension_semantics = [#tpu.dimension_semantics<parallel>], iteration_bounds = array<i64: 1>, scalar_prefetch = 0 : i64, scratch_operands = 0 : i64, tpu.core_type = #tpu.core_type<tc>, window_params = [{transform_indices = @transform_0, window_bounds = array<i64: 7, 128>}, {pipeline_mode = #tpu.pipeline_mode<synchronous>, transform_indices = @transform_1, window_bounds = array<i64: 40, 7>}, {pipeline_mode = #tpu.pipeline_mode<synchronous>, transform_indices = @transform_2, window_bounds = array<i64: 40, 1>}, {pipeline_mode = #tpu.pipeline_mode<synchronous>, transform_indices = @transform_3, window_bounds = array<i64: 1, 40>}, {pipeline_mode = #tpu.pipeline_mode<synchronous>, transform_indices = @transform_4, window_bounds = array<i64: 1, 1>}, {transform_indices = @transform_5, window_bounds = array<i64: 1, 128>}]} {
    %c0 = arith.constant 0 : index
    %c0_0 = arith.constant 0 : index
    %0 = vector.load %arg2[%c0, %c0_0] : memref<40x7xbf16, #tpu.memory_space<vmem>>, vector<40x7xbf16>
    %c0_1 = arith.constant 0 : index
    %c0_2 = arith.constant 0 : index
    %1 = vector.load %arg1[%c0_1, %c0_2] : memref<7x128xbf16, #tpu.memory_space<vmem>>, vector<7x128xbf16>
    %cst = arith.constant dense<0.000000e+00> : vector<40x128xf32>
    %2 = tpu.matmul %0, %1, %cst {dimension_numbers = #tpu.dot_dimension_numbers<[1], [0], [0], [1], [0, 0, 1, 1], [], []>} : vector<40x7xbf16>, vector<7x128xbf16>, vector<40x128xf32> -> vector<40x128xf32>
    %c0_3 = arith.constant 0 : index
    %c0_4 = arith.constant 0 : index
    %3 = vector.load %arg3[%c0_3, %c0_4] : memref<40x1xf32, #tpu.memory_space<vmem>>, vector<40x1xf32>
    %4 = vector.broadcast %3 : vector<40x1xf32> to vector<40x128xf32>
    %5 = arith.addf %2, %4 : vector<40x128xf32>
    %cst_5 = arith.constant 0.000000e+00 : f32
    %6 = vector.broadcast %cst_5 : f32 to vector<40x128xf32>
    %7 = arith.maximumf %5, %6 : vector<40x128xf32>
    %c0_6 = arith.constant 0 : index
    %c0_7 = arith.constant 0 : index
    %8 = vector.load %arg4[%c0_6, %c0_7] : memref<1x40xf32, #tpu.memory_space<vmem>>, vector<1x40xf32>
    %cst_8 = arith.constant dense<0.000000e+00> : vector<1x128xf32>
    %9 = tpu.matmul %8, %7, %cst_8 {dimension_numbers = #tpu.dot_dimension_numbers<[1], [0], [0], [1], [0, 0, 1, 1], [], []>} : vector<1x40xf32>, vector<40x128xf32>, vector<1x128xf32> -> vector<1x128xf32>
    %c0_9 = arith.constant 0 : index
    %c0_10 = arith.constant 0 : index
    %10 = vector.load %arg5[%c0_9, %c0_10] : memref<1x1xf32, #tpu.memory_space<vmem>>, vector<1x1xf32>
    %11 = vector.broadcast %10 : vector<1x1xf32> to vector<1x128xf32>
    %12 = arith.addf %9, %11 : vector<1x128xf32>
    %c0_11 = arith.constant 0 : index
    %c0_12 = arith.constant 0 : index
    %13 = vector.load %arg6[%c0_11, %c0_12] : memref<1x128xf32, #tpu.memory_space<vmem>>, vector<1x128xf32>
    tpu.vector_store %arg6[%c0_11, %c0_12], %12 {strides = array<i32>} : memref<1x128xf32, #tpu.memory_space<vmem>>, vector<1x128xf32>,
    return
  }
  func.func @transform_0(%arg0: i32) -> (i32, i32) {
    %c0_i32 = arith.constant 0 : i32
    %c0_i32_0 = arith.constant 0 : i32
    return %c0_i32, %arg0 : i32, i32
  }
  func.func @transform_1(%arg0: i32) -> (i32, i32) {
    %c0_i32 = arith.constant 0 : i32
    %c0_i32_0 = arith.constant 0 : i32
    %c0_i32_1 = arith.constant 0 : i32
    return %c0_i32, %c0_i32_0 : i32, i32
  }
  func.func @transform_2(%arg0: i32) -> (i32, i32) {
    %c0_i32 = arith.constant 0 : i32
    %c0_i32_0 = arith.constant 0 : i32
    %c0_i32_1 = arith.constant 0 : i32
    return %c0_i32, %c0_i32_0 : i32, i32
  }
  func.func @transform_3(%arg0: i32) -> (i32, i32) {
    %c0_i32 = arith.constant 0 : i32
    %c0_i32_0 = arith.constant 0 : i32
    %c0_i32_1 = arith.constant 0 : i32
    return %c0_i32, %c0_i32_0 : i32, i32
  }
  func.func @transform_4(%arg0: i32) -> (i32, i32) {
    %c0_i32 = arith.constant 0 : i32
    %c0_i32_0 = arith.constant 0 : i32
    %c0_i32_1 = arith.constant 0 : i32
    return %c0_i32, %c0_i32_0 : i32, i32
  }
  func.func @transform_5(%arg0: i32) -> (i32, i32) {
    %c0_i32 = arith.constant 0 : i32
    %c0_i32_0 = arith.constant 0 : i32
    return %c0_i32, %arg0 : i32, i32
  }
}

</mosaic_0001>

<bundles_post_ra>
// kernel: tpu_custom_call.1
= control target key start
LH: loop header
LB: loop body
LE: loop exit
PB: predicated region body
PF: predicated region fallthrough
CT: control target
= control target key end

     0   :  { %s433_s0 = inlined_call_operand.vmem [shape: bf16[7,128], index: 0, kind: input, shape index: {}]   ;;  %s434_s1 = inlined_call_operand.vmem [shape: bf16[40,7], index: 1, kind: input, shape index: {}]   ;;  %s435_s2 = inlined_call_operand.vmem [shape: f32[40,1], index: 2, kind: input, shape index: {}]   ;;  %s436_s3 = inlined_call_operand.vmem [shape: f32[1,40], index: 3, kind: input, shape index: {}]   ;;  %s437_s4 = inlined_call_operand.<no memory space> [shape: f32[1,1], index: 4, kind: input, shape index: {}]   ;;  %s438_s5 = inlined_call_operand.hbm [shape: f32[1,128], index: 5, kind: output, shape index: {}]  }
   0x1   :  { %v10_v0 = vstv %s437_s4 }
   0x2   :  { %11 = vst [vmem:[#allocation2] sm:$0x1] %v10_v0 }
   0x3   :  { %v29_v1 = vld [vmem:[%s433_s0] sm:$0xf]  ;;  %vm83_vm0 = vcmask 1042432   ;;  %vm84_vm1 = vcmask 1043456   ;;  %v338_v2 = vmov 0.0   ;;  %v339_v3 = vmov 65535  }
   0x4   :  { %268 = vmatprep.subr.bf16.mxu0 %v338_v2  ;;  %v85_v4 = vsel %vm83_vm0, 4294967295, %v339_v3  ;;  %301 = vmatprep.subr.bf16.mxu1 %v338_v2  ;;  %vm340_vm2 = vmmov 0   ;;  %v311_v7 = vld [vmem:[%s434_s1] sm:$0xff]   ;;  %v312_v8 = vld [vmem:[%s434_s1 + $0x10] ss:$0 sps:$4 sm:$0xff]   ;;  %vm73_vm3 = vcmask 56320  }
   0x5   :  { %v86_v5 = vsel %vm84_vm1, %v85_v4, 0  ;;  %270 = vmatprep.mubr.msk.bf16.mxu0 %vm340_vm2, %v338_v2  ;;  %278 = vmatprep.mubr.msk.bf16.mxu1 %vm340_vm2, %v338_v2  ;;  %v30_v9 = vld [vmem:[%s435_s2] sm:$0xff]  ;;  %v32_v10 = vld [vmem:[%s435_s2 + $0x10] sm:$0xff]  ;;  %v341_v11 = vmov 0  }
   0x6   :  { %v88_v6 = vand.u32 %v86_v5, %v29_v1  ;;  %309 = vset.pattern.permute.xlu0 %v341_v11  ;;  %310 = vset.pattern.permute.xlu1 %v341_v11 }
   0x8   :  { %269 = vmatpush3.bf16.msra.mxu0 %v88_v6  ;;  %302 = vmatpush3.bf16.msra.mxu1 %v88_v6 }
   0x9   :  { %12 = vsyncpa [#allocation4], 0  ;;  %37 = vperm.xlu0 %309, %v30_v9   ;;  %47 = vperm.xlu1 %310, %v32_v10   ;;  %v31_v12 = vld [vmem:[%s435_s2 + $0x8] sm:$0xff]  ;;  %v33_v13 = vld [vmem:[%s435_s2 + $0x18] sm:$0xff]  ;;  %v342_v17 = vmov 0.0|0.0   ;;  %vm162_vm4 = vcmask 326656   ;;  %v158_v48 = vlaneseq }
   0xa   :  { %v313_v14 = vld [vmem:[%s434_s1 + $0x8] sm:$0xff]   ;;  %v34_v15 = vld [vmem:[%s435_s2 + $0x20] sm:$0xff]  ;;  %295 = vmatprep.subr.bf16.mxu1 %v342_v17  ;;  %s343_s11 = smov [#allocation3]  }
   0xb   :  { %271 = vmatmul.mubr.msk.bf16.vlgmr.msra.gmra.mrb[0].mxu0 %vm73_vm3, %v311_v7  ;;  %279 = vmatmul.mubr.msk.bf16.vlgmr.msra.gmra.mrb[0].mxu1 %vm73_vm3, %v312_v8  ;;  %v152_v16 = vld [vmem:[#allocation2] sm:$0x1]  ;;  %v159_v49 = vshrl.u32 %v158_v48, 7  ;;  %s243_s12 = sshll.u32 %s343_s11, 4  ;;  %s244_s12 = int_to_ptr.vmem [resolvable:$true] %s243_s12 }
   0xc   :  { %274 = vmatprep.mubr.msk.bf16.mxu0 %vm340_vm2, %v338_v2  ;;  %292 = vmatprep.mubr.msk.f32.mxu1 %vm340_vm2, %v338_v2  ;;  %v151_v47 = vld [vmem:[%s436_s3] sm:$0x1]  ;;  %s314_s13 = scalar_lea.vmem %s244_s12, 16  ;;  %s318_s14 = scalar_lea.vmem %s244_s12, 32 }
   0xd   :  { %42 = vperm.xlu0 %309, %v31_v12   ;;  %52 = vperm.xlu1 %310, %v33_v13   ;;  %v160_v50 = vsub.s32 0, %v159_v49  ;;  %p315_p0 = scmp.ne.s32.totalorder %s244_s12, %s314_s13  ;;  %p319_p1 = scmp.lt.s32.totalorder %s244_s12, %s244_s12 }
   0xe   :  { %p320_p2 = scmp.lt.s32.totalorder %s318_s14, %s314_s13 }
  0x10   :  { %p321_p3 = por %p320_p2, %p319_p1 }
  0x11   :  { %57 = vperm.xlu0 %309, %v34_v15   ;;  %155 = vperm.xlu1 %310, %v152_v16  }
  0x12   :  { %p322_p4 = pnand %p321_p3, %p315_p0 }
  0x13   :  { %275 = vmatmul.mubr.msk.bf16.gmra.mrb[4].mxu0 %vm73_vm3, %v313_v14 }
  0x88   :  { %v38_v18 = vpop.permute.xlu0 %37  ;;  %v48_v30 = vpop.permute.xlu1 %47 }
  0x8c   :  { %v43_v19 = vpop.permute.xlu0 %42  ;;  %v53_v37 = vpop.permute.xlu1 %52 }
  0x90   :  { %v58_v41 = vpop.permute.xlu0 %57  ;;  %v156_v51 = vpop.permute.xlu1 %155 }
  0x91   :  { %v161_v52 = vrot.slane %v156_v51, %v160_v50 }
  0xde   :  { %v124_v20 = vpop.f32.mrb[0].mxu0  ;;  %v140_v21 = vpop.f32.mrb[0].mxu1 }
  0xdf   :  { %v125_v22 = vadd.f32 %v124_v20, %v38_v18  ;;  %v272_v23 = vpop.f32.mrb[1].mxu0  ;;  %v280_v24 = vpop.f32.mrb[1].mxu1  ;;  %v141_v44 = vadd.f32 %v140_v21, %v58_v41 }
  0xe0   :  { %v127_v25 = vpop.f32.mrb[2].mxu0  ;;  %v143_v26 = vpop.f32.mrb[2].mxu1 }
  0xe1   :  { %v128_v27 = vadd.f32 %v127_v25, %v43_v19  ;;  %v273_v28 = vpop.f32.mrb[3].mxu0  ;;  %v281_v29 = vpop.f32.mrb[3].mxu1  ;;  %v146_v31 = vmax.f32 %v125_v22, 0.0  ;;  %v150_v46 = vmax.f32 %v141_v44, 0.0 }
  0xe3   :  { %v147_v32 = vmax.f32 %v128_v27, 0.0 }
  0xe5   :  { %v296_v33 = vpack.c.bf16 %v147_v32, %v146_v31 }
  0xe6   :  { %v132_v34 = vpop.f32.mrb[4].mxu0 }
  0xe7   :  { %v133_v35 = vadd.f32 %v132_v34, %v48_v30  ;;  %v276_v36 = vpop.f32.mrb[5].mxu0  ;;  %297 = vmatpush3.bf16.msra.mxu1 %v296_v33 }
  0xe8   :  { %v135_v38 = vpop.f32.mrb[6].mxu0  ;;  %298 = vmatprep.subr.bf16.mxu1 %v342_v17 }
  0xe9   :  { %v136_v39 = vadd.f32 %v135_v38, %v53_v37  ;;  %v277_v40 = vpop.f32.mrb[7].mxu0  ;;  %v148_v42 = vmax.f32 %v133_v35, 0.0 }
  0xeb   :  { %v149_v43 = vmax.f32 %v136_v39, 0.0 }
  0xed   :  { %v299_v45 = vpack.c.bf16 %v149_v43, %v148_v42 }
  0xef   :  { %300 = vmatpush3.bf16.msra.mxu1 %v299_v45 }
  0xf0   :  { %290 = vmatprep.subr.mxu1 %v338_v2 }
  0xf3   :  { %291 = vmatpush3.msra.mxu1 %v150_v46 }
  0xf4   :  { %293 = vmatmul.mubr.msk.f32.vlgmr.msra.gmra.mrb[4].mxu1 %vm162_vm4, %v151_v47 }
 0x1c7   :  { %v232_v53 = vpop.f32.mrb[4].mxu1 }
 0x1c8   :  { %v233_v54 = vadd.f32 %v232_v53, %v161_v52  ;;  %v294_v55 = vpop.f32.mrb[5].mxu1 }
 0x1ca   :  { %236 = vst [vmem:[#allocation3] sm:$0x1] %v233_v54 }
 0x1cb   :  { %325 = shalt.err (!%p322_p4)
}
 0x1cc   :  { %s326_s16 = scalar_lea.hbm %s438_s5, 16 }
 0x1cd   :  { %p327_p5 = scmp.ne.s32.totalorder %s438_s5, %s326_s16  ;;  %p330_p6 = scmp.lt.u32.totalorder %s326_s16, %s438_s5 }
 0x1cf   :  { %p332_p7 = pnand %p330_p6, %p327_p5 }
 0x1d1   :  { %335 = shalt.err (!%p332_p7)
}
 0x1d2   :  { %246 = dma.vmem_to_hbm [thread:$0]  %s244_s12, 16, %s438_s5, [#allocation4]  }
 0x1d3   :  { %336 = dma.done.wait [#allocation4], 16  }
 0x1d4   :  { %337 = vsyncadd [#allocation4], 4294967280 }
 0x1d5   :  { %250 = vsyncpa [#allocation4], 1 }

</bundles_post_ra>
